<compile_context>
chip_gen: v5e
topology: v5e:2x2
jax: 0.10.0
libtpu: 0.0.40
codegen_flags: <defaults>
</compile_context>

<pallas_src>
import functools
import math

import jax
import jax.numpy as jnp
from jax import lax
from jax.experimental import pallas as pl
from jax.experimental.pallas import tpu as pltpu


# ------------------------------ tiling helpers -------------------------------

LANE = 128
SUBLANE_BF16 = 16          # bf16 sublane packing (use for graph-row padding)
NODE_PAD = 512             # node dimension padded to a multiple of this


def _round_up(x, m):
    return ((x + m - 1) // m) * m


def _vmem_limit_bytes():
    """Per-generation scoped VMEM limit (v7x: 64 MiB physical; v5e/v6e: 128 MiB)."""
    try:
        cap = pltpu.get_tpu_info().vmem_capacity_bytes
    except Exception:
        cap = 64 * 1024 * 1024
    return max(32 * 1024 * 1024, min(int(cap) * 3 // 4, 100 * 1024 * 1024))


def _pick_tiles(n_pad):
    """Large stage-2 tiles; keep an even row-tile count when possible so the
    'parallel' row axis splits evenly across v7x's two TensorCores."""
    tm = 1024 if n_pad % 1024 == 0 else 512
    tm = min(tm, n_pad)
    tk = 2048 if n_pad % 2048 == 0 else (1024 if n_pad % 1024 == 0 else 512)
    tk = min(tk, n_pad)
    ni = n_pad // tm
    if ni > 1 and ni % 2 == 1 and tm % 512 == 0:
        tm //= 2            # 256+ keeps int8 (32,128) / bf16 (16,128) tiling legal
    return tm, tk


# ------------------------------ Pallas kernels -------------------------------

def _xw_kernel(h0_ref, w1_ref, d_ref, xw_ref):
    # XW_scaled[row_tile] = D^-1/2 * (relu(H0) @ W1)
    # (degree scaling factored here so stage 2 streams an exact 0/1 (A+I) int8).
    x = jnp.maximum(h0_ref[...].astype(jnp.float32), 0.0)
    xw = jnp.dot(x, w1_ref[...], preferred_element_type=jnp.float32)
    xw_ref[...] = (xw * d_ref[...]).astype(xw_ref.dtype)


def _aggregate_pool_kernel(a_ref, xw_ref, d_ref, b1_ref, pool_ref,
                           pooled_ref, acc_ref, *, tk, xw_resident):
    # acc[row_tile] = sum_k (A+I)[row_tile, k] @ XW_scaled[k]
    # last-K epilogue: H1 = relu(D^-1/2 * acc + b1);
    #                  pooled_partial[i] = P[:, row_tile] @ H1   (pool fused here,
    #                  so H1 never touches HBM).
    k = pl.program_id(1)

    @pl.when(k == 0)
    def _():
        acc_ref[...] = jnp.zeros_like(acc_ref)

    a = a_ref[...].astype(jnp.bfloat16)        # int8 0/1 -> bf16 (VPU, hidden under DMA)
    if xw_resident:
        start = pl.multiple_of(k * tk, tk)     # slice the VMEM-resident XW
        xw_k = xw_ref[pl.ds(start, tk), :]
    else:
        xw_k = xw_ref[...]
    acc_ref[...] += jnp.dot(a, xw_k, preferred_element_type=jnp.float32)

    @pl.when(k == pl.num_programs(1) - 1)
    def _():
        h1 = jnp.maximum(acc_ref[...] * d_ref[...] + b1_ref[...], 0.0)
        pooled_ref[0] = jnp.dot(pool_ref[...], h1.astype(jnp.bfloat16),
                                preferred_element_type=jnp.float32)


def _head_kernel(part_ref, wfc_ref, bfc_ref, out_ref, *, num_classes):
    # pooled = sum over row-tile partials; logits = pooled @ Wfc + bfc;
    # masked log_softmax over the lane-padded class axis.
    pooled = jnp.sum(part_ref[...], axis=0)
    logits = jnp.dot(pooled, wfc_ref[...],
                     preferred_element_type=jnp.float32) + bfc_ref[...]
    col = lax.broadcasted_iota(jnp.int32, logits.shape, 1)
    logits = jnp.where(col < num_classes, logits, -1e30)
    m = jnp.max(logits, axis=1, keepdims=True)
    z = logits - m
    lse = jnp.log(jnp.sum(jnp.exp(z), axis=1, keepdims=True))
    out_ref[...] = z - lse


# --------------------------- pallas_call wrappers ----------------------------

def _xw_stage(h0_p, w1_p, d_inv, tm, vmem_limit):
    n_pad, h_pad = h0_p.shape
    return pl.pallas_call(
        _xw_kernel,
        out_shape=jax.ShapeDtypeStruct((n_pad, h_pad), jnp.bfloat16),
        grid_spec=pltpu.PrefetchScalarGridSpec(
            num_scalar_prefetch=0,
            grid=(n_pad // tm,),
            in_specs=[pl.BlockSpec((tm, h_pad), lambda i: (i, 0)),
                      pl.BlockSpec((h_pad, h_pad), lambda i: (0, 0)),
                      pl.BlockSpec((tm, 1), lambda i: (i, 0))],
            out_specs=pl.BlockSpec((tm, h_pad), lambda i: (i, 0)),
        ),
        compiler_params=pltpu.CompilerParams(
            dimension_semantics=("parallel",),
            vmem_limit_bytes=vmem_limit),
        cost_estimate=pl.CostEstimate(
            flops=2 * n_pad * h_pad * h_pad,
            transcendentals=0,
            bytes_accessed=2 * n_pad * h_pad + 4 * h_pad * h_pad
                           + 4 * n_pad + 2 * n_pad * h_pad),
    )(h0_p, w1_p, d_inv)


def _aggregate_pool_stage(a_p, xw, d_inv, b1_p, pool_p, tm, tk,
                          xw_resident, vmem_limit):
    n_pad = a_p.shape[0]
    h_pad = xw.shape[1]
    g_pad = pool_p.shape[0]
    ni = n_pad // tm
    nk = n_pad // tk
    if xw_resident:
        xw_spec = pl.BlockSpec((n_pad, h_pad), lambda i, k: (0, 0))
        xw_stream_bytes = 2 * n_pad * h_pad
    else:
        xw_spec = pl.BlockSpec((tk, h_pad), lambda i, k: (k, 0))
        xw_stream_bytes = 2 * n_pad * h_pad * ni
    kernel = functools.partial(_aggregate_pool_kernel, tk=tk,
                               xw_resident=xw_resident)
    return pl.pallas_call(
        kernel,
        out_shape=jax.ShapeDtypeStruct((ni, g_pad, h_pad), jnp.float32),
        grid_spec=pltpu.PrefetchScalarGridSpec(
            num_scalar_prefetch=0,
            grid=(ni, nk),
            in_specs=[pl.BlockSpec((tm, tk), lambda i, k: (i, k)),     # (A+I) int8
                      xw_spec,                                          # XW_scaled bf16
                      pl.BlockSpec((tm, 1), lambda i, k: (i, 0)),       # row d^-1/2
                      pl.BlockSpec((1, h_pad), lambda i, k: (0, 0)),    # b1
                      pl.BlockSpec((g_pad, tm), lambda i, k: (0, i))],  # pool cols bf16
            out_specs=pl.BlockSpec((1, g_pad, h_pad), lambda i, k: (i, 0, 0)),
            scratch_shapes=[pltpu.VMEM((tm, h_pad), jnp.float32)],
        ),
        compiler_params=pltpu.CompilerParams(
            dimension_semantics=("parallel", "arbitrary"),
            vmem_limit_bytes=vmem_limit),
        cost_estimate=pl.CostEstimate(
            flops=2 * n_pad * n_pad * h_pad + 2 * g_pad * n_pad * h_pad,
            transcendentals=0,
            bytes_accessed=n_pad * n_pad                 # int8 adjacency stream
                           + xw_stream_bytes             # XW (resident or re-streamed)
                           + 2 * g_pad * n_pad           # bf16 pool matrix
                           + 4 * ni * g_pad * h_pad),    # pooled partials writeback
    )(a_p, xw, d_inv, b1_p, pool_p)


def _head_stage(pooled_parts, wfc_p, bfc_p, num_classes, vmem_limit):
    ni, g_pad, h_pad = pooled_parts.shape
    t_pad = wfc_p.shape[1]
    return pl.pallas_call(
        functools.partial(_head_kernel, num_classes=num_classes),
        out_shape=jax.ShapeDtypeStruct((g_pad, t_pad), jnp.float32),
        grid_spec=pltpu.PrefetchScalarGridSpec(
            num_scalar_prefetch=0,
            grid=(1,),
            in_specs=[pl.BlockSpec((ni, g_pad, h_pad), lambda i: (0, 0, 0)),
                      pl.BlockSpec((h_pad, t_pad), lambda i: (0, 0)),
                      pl.BlockSpec((1, t_pad), lambda i: (0, 0))],
            out_specs=pl.BlockSpec((g_pad, t_pad), lambda i: (0, 0)),
        ),
        compiler_params=pltpu.CompilerParams(
            dimension_semantics=("arbitrary",),
            vmem_limit_bytes=vmem_limit),
        cost_estimate=pl.CostEstimate(
            flops=2 * g_pad * h_pad * t_pad,
            transcendentals=g_pad * t_pad,
            bytes_accessed=4 * ni * g_pad * h_pad + 4 * h_pad * t_pad
                           + 4 * t_pad + 4 * g_pad * t_pad),
    )(pooled_parts, wfc_p, bfc_p)


# -------------------------------- JAX glue -----------------------------------

def mean_pool_matrix(batch, num_graphs, num_nodes):
    """[G, N] matrix whose row g averages the nodes of graph g."""
    onehot = (batch[None, :] == jnp.arange(num_graphs)[:, None]).astype(jnp.float32)
    counts = jnp.maximum(jnp.sum(onehot, axis=1, keepdims=True), 1.0)
    return onehot / counts


def init_params(key, node_embed_sizes, hidden_size, target_size):
    n_emb = len(node_embed_sizes)
    keys = jax.random.split(key, n_emb + 4)
    embeds = [
        0.1 * jax.random.normal(keys[i], (v, hidden_size), jnp.float32)
        for i, v in enumerate(node_embed_sizes)
    ]
    w1 = jax.random.normal(keys[n_emb], (hidden_size, hidden_size), jnp.float32)
    w1 = w1 * (1.0 / math.sqrt(hidden_size))
    b1 = 0.01 * jax.random.normal(keys[n_emb + 1], (1, hidden_size), jnp.float32)
    wfc = jax.random.normal(keys[n_emb + 2], (hidden_size, target_size), jnp.float32)
    wfc = wfc * (1.0 / math.sqrt(hidden_size))
    bfc = 0.01 * jax.random.normal(keys[n_emb + 3], (1, target_size), jnp.float32)
    return {"embeds": embeds, "w1": w1, "b1": b1, "wfc": wfc, "bfc": bfc}


def forward(params, act, location, edge_index, batch, num_graphs):
    hidden = params["w1"].shape[0]
    target = params["wfc"].shape[1]
    num_nodes = act.shape[0]

    h_pad = _round_up(hidden, LANE)
    t_pad = _round_up(target, LANE)
    n_pad = _round_up(num_nodes, NODE_PAD)
    g_pad = _round_up(num_graphs, SUBLANE_BF16)

    tm, tk = _pick_tiles(n_pad)
    vmem_limit = _vmem_limit_bytes()

    # MultiTokenEmbedSum: per-field embedding lookup, summed (gather = glue), bf16.
    h0 = params["embeds"][0][act] + params["embeds"][1][location]
    h0_p = (jnp.zeros((n_pad, h_pad), jnp.bfloat16)
            .at[:num_nodes, :hidden].set(h0.astype(jnp.bfloat16)))

    # (A+I) built directly in the streamed compressed form: exact 0/1 int8, padded.
    # Degree normalization D^-1/2 is factored into the kernels, so the big matrix
    # carries no quantization error and costs 1 byte/entry of HBM traffic.
    src, dst = edge_index[0], edge_index[1]
    diag = jnp.arange(num_nodes)
    a_p = jnp.zeros((n_pad, n_pad), jnp.int8)
    a_p = a_p.at[dst, src].set(1)
    a_p = a_p.at[diag, diag].add(1)
    deg = jnp.sum(a_p.astype(jnp.int32), axis=1).astype(jnp.float32)
    d_inv = jnp.where(deg > 0, lax.rsqrt(deg), 0.0).reshape(n_pad, 1)
    # TODO(synk): block-sparse adjacency (prefetch-driven index_map over nonzero
    # column blocks) to replace this dense padded int8 matrix for large sparse graphs.

    # Mean-pool matrix (zero columns for padded nodes -> padded rows never pooled).
    pool = mean_pool_matrix(batch, num_graphs, num_nodes)
    pool_p = (jnp.zeros((g_pad, n_pad), jnp.float32)
              .at[:num_graphs, :num_nodes].set(pool).astype(jnp.bfloat16))

    # Lane-pad parameters (zero padding preserves semantics).
    w1_p = jnp.zeros((h_pad, h_pad), jnp.float32).at[:hidden, :hidden].set(params["w1"])
    b1_p = jnp.zeros((1, h_pad), jnp.float32).at[:, :hidden].set(params["b1"])
    wfc_p = jnp.zeros((h_pad, t_pad), jnp.float32).at[:hidden, :target].set(params["wfc"])
    bfc_p = jnp.zeros((1, t_pad), jnp.float32).at[:, :target].set(params["bfc"])

    # Pin XW fully resident in VMEM when (XW x2 + double-buffered adjacency tile +
    # accumulator + pool tile) fits comfortably inside the scoped limit.
    xw_bytes = 2 * n_pad * h_pad
    working = 2 * xw_bytes + 2 * tm * tk + 4 * tm * h_pad + 2 * g_pad * tm
    xw_resident = working <= int(0.6 * vmem_limit)

    xw = _xw_stage(h0_p, w1_p, d_inv, tm, vmem_limit)                 # [N_pad,H_pad] bf16
    pooled_parts = _aggregate_pool_stage(a_p, xw, d_inv, b1_p, pool_p,
                                         tm, tk, xw_resident, vmem_limit)
    out_p = _head_stage(pooled_parts, wfc_p, bfc_p, target, vmem_limit)

    # F.dropout(training=False) -> identity (eval mode).
    return out_p[:num_graphs, :target]


# ------------------------------- Reference -----------------------------------

def gcn_norm_adjacency_ref(edge_index, num_nodes):
    src = edge_index[0]
    dst = edge_index[1]
    a = jnp.zeros((num_nodes, num_nodes), jnp.float32).at[dst, src].set(1.0)
    a = a + jnp.eye(num_nodes, dtype=jnp.float32)
    deg = jnp.sum(a, axis=1)
    d_inv_sqrt = jnp.where(deg > 0, 1.0 / jnp.sqrt(deg), 0.0)
    return d_inv_sqrt[:, None] * a * d_inv_sqrt[None, :]


def forward_reference(params, act, location, edge_index, batch, num_graphs):
    h0 = params["embeds"][0][act] + params["embeds"][1][location]
    x = jax.nn.relu(h0)
    a_norm = gcn_norm_adjacency_ref(edge_index, act.shape[0])
    x = a_norm @ (x @ params["w1"]) + params["b1"]
    x = jax.nn.relu(x)
    pool = mean_pool_matrix(batch, num_graphs, act.shape[0])
    g = pool @ x
    logits = g @ params["wfc"] + params["bfc"]
    return jax.nn.log_softmax(logits, axis=1)


# --------------------------------- Main ---------------------------------------

if __name__ == "__main__":
    node_embed_sizes = [10, 7]   # vocab sizes for (act, location)
    hidden_size = 32
    target_size = 4
    num_nodes = 8
    num_graphs = 2

    key = jax.random.PRNGKey(0)
    k_params, k_act, k_loc = jax.random.split(key, 3)

    params = init_params(k_params, node_embed_sizes, hidden_size, target_size)

    act = jax.random.randint(k_act, (num_nodes,), 0, node_embed_sizes[0], jnp.int32)
    location = jax.random.randint(k_loc, (num_nodes,), 0, node_embed_sizes[1], jnp.int32)
    # Two small chain graphs of 4 nodes each (directed edges; batch assignment below).
    edge_index = jnp.array(
        [[0, 1, 2, 1, 2, 3, 4, 5, 6, 5, 6, 7],
         [1, 2, 3, 0, 1, 2, 5, 6, 7, 4, 5, 6]], dtype=jnp.int32)
    batch = jnp.array([0, 0, 0, 0, 1, 1, 1, 1], dtype=jnp.int32)

    out = forward(params, act, location, edge_index, batch, num_graphs)
    out = jax.block_until_ready(out)

    ref = forward_reference(params, act, location, edge_index, batch, num_graphs)
    assert out.shape == (num_graphs, target_size)
    # bf16 embeddings / XW / pool streaming -> compare vs f32 reference with a
    # tolerance covering bf16 rounding (adjacency itself is now exact int8 0/1).
    assert jnp.allclose(out, ref, atol=1e-2, rtol=1e-2), "mismatch vs JAX reference"

    print("KERNEL_OK")
</pallas_src>

<mosaic_0001>
module attributes {stable_mosaic.version = 11 : i64} {
  func.func @_xw_kernel(%arg0: i32, %arg1: memref<512x128xbf16, #tpu.memory_space<vmem>>, %arg2: memref<128x128xf32, #tpu.memory_space<vmem>>, %arg3: memref<512x1xf32, #tpu.memory_space<vmem>>, %arg4: memref<512x128xbf16, #tpu.memory_space<vmem>>) attributes {dimension_semantics = [#tpu.dimension_semantics<parallel>], iteration_bounds = array<i64: 1>, scalar_prefetch = 0 : i64, scratch_operands = 0 : i64, tpu.core_type = #tpu.core_type<tc>, window_params = [{transform_indices = @transform_0, window_bounds = array<i64: 512, 128>}, {pipeline_mode = #tpu.pipeline_mode<synchronous>, transform_indices = @transform_1, window_bounds = array<i64: 128, 128>}, {transform_indices = @transform_2, window_bounds = array<i64: 512, 1>}, {transform_indices = @transform_3, window_bounds = array<i64: 512, 128>}]} {
    %c0 = arith.constant 0 : index
    %c0_0 = arith.constant 0 : index
    %0 = vector.load %arg1[%c0, %c0_0] : memref<512x128xbf16, #tpu.memory_space<vmem>>, vector<512x128xbf16>
    %1 = arith.extf %0 : vector<512x128xbf16> to vector<512x128xf32>
    %cst = arith.constant 0.000000e+00 : f32
    %2 = vector.broadcast %cst : f32 to vector<512x128xf32>
    %3 = arith.maximumf %1, %2 : vector<512x128xf32>
    %c0_1 = arith.constant 0 : index
    %c0_2 = arith.constant 0 : index
    %4 = vector.load %arg2[%c0_1, %c0_2] : memref<128x128xf32, #tpu.memory_space<vmem>>, vector<128x128xf32>
    %cst_3 = arith.constant dense<0.000000e+00> : vector<512x128xf32>
    %5 = tpu.matmul %3, %4, %cst_3 {dimension_numbers = #tpu.dot_dimension_numbers<[1], [0], [0], [1], [0, 0, 1, 1], [], []>} : vector<512x128xf32>, vector<128x128xf32>, vector<512x128xf32> -> vector<512x128xf32>
    %c0_4 = arith.constant 0 : index
    %c0_5 = arith.constant 0 : index
    %6 = vector.load %arg3[%c0_4, %c0_5] : memref<512x1xf32, #tpu.memory_space<vmem>>, vector<512x1xf32>
    %7 = vector.broadcast %6 : vector<512x1xf32> to vector<512x128xf32>
    %8 = arith.mulf %5, %7 : vector<512x128xf32>
    %9 = arith.truncf %8 : vector<512x128xf32> to vector<512x128xbf16>
    %c0_6 = arith.constant 0 : index
    %c0_7 = arith.constant 0 : index
    %10 = vector.load %arg4[%c0_6, %c0_7] : memref<512x128xbf16, #tpu.memory_space<vmem>>, vector<512x128xbf16>
    tpu.vector_store %arg4[%c0_6, %c0_7], %9 {strides = array<i32>} : memref<512x128xbf16, #tpu.memory_space<vmem>>, vector<512x128xbf16>,
    return
  }
  func.func @transform_0(%arg0: i32) -> (i32, i32) {
    %c0_i32 = arith.constant 0 : i32
    %c0_i32_0 = arith.constant 0 : i32
    return %arg0, %c0_i32 : i32, i32
  }
  func.func @transform_1(%arg0: i32) -> (i32, i32) {
    %c0_i32 = arith.constant 0 : i32
    %c0_i32_0 = arith.constant 0 : i32
    %c0_i32_1 = arith.constant 0 : i32
    return %c0_i32, %c0_i32_0 : i32, i32
  }
  func.func @transform_2(%arg0: i32) -> (i32, i32) {
    %c0_i32 = arith.constant 0 : i32
    %c0_i32_0 = arith.constant 0 : i32
    return %arg0, %c0_i32 : i32, i32
  }
  func.func @transform_3(%arg0: i32) -> (i32, i32) {
    %c0_i32 = arith.constant 0 : i32
    %c0_i32_0 = arith.constant 0 : i32
    return %arg0, %c0_i32 : i32, i32
  }
}

</mosaic_0001>

<bundles_post_ra>
// kernel: tpu_custom_call.1
= control target key start
LH: loop header
LB: loop body
LE: loop exit
PB: predicated region body
PF: predicated region fallthrough
CT: control target
= control target key end

     0   :  { %v1457_v1 = vmov 0   ;;  %s1952_s0 = inlined_call_operand.vmem [shape: bf16[512,128], index: 0, kind: input, shape index: {}]   ;;  %s1953_s1 = inlined_call_operand.vmem [shape: f32[128,128], index: 1, kind: input, shape index: {}]   ;;  %s1954_s2 = inlined_call_operand.vmem [shape: f32[512,1], index: 2, kind: input, shape index: {}]   ;;  %s1955_s3 = inlined_call_operand.hbm [shape: bf16[512,128], index: 3, kind: output, shape index: {}]  }
   0x1   :  { %v222_v0 = vld [vmem:[%s1953_s1 + $0x78] sm:$0xff]  ;;  %1430 = vset.pattern.permute.xlu2 %v1457_v1  ;;  %1429 = vset.pattern.permute.xlu1 %v1457_v1  ;;  %v436_v2 = vld [vmem:[%s1954_s2 + $0x20] sm:$0xff]  ;;  %v434_v3 = vld [vmem:[%s1954_s2 + $0x10] sm:$0xff] }
   0x2   :  { %1428 = vset.pattern.permute.xlu0 %v1457_v1  ;;  %223 = vmatpush.msra.mxu0 %v222_v0  ;;  %v432_v4 = vld [vmem:[%s1954_s2] sm:$0xff]  ;;  %v221_v5 = vld [vmem:[%s1953_s1 + $0x70] sm:$0xff]  ;;  %v220_v6 = vld [vmem:[%s1953_s1 + $0x68] sm:$0xff] }
   0x3   :  { %1376 = vmatpush.msra.mxu1 %v222_v0  ;;  %1377 = vmatpush.msra.mxu2 %v222_v0  ;;  %v219_v7 = vld [vmem:[%s1953_s1 + $0x60] sm:$0xff]  ;;  %v218_v8 = vld [vmem:[%s1953_s1 + $0x58] sm:$0xff]  ;;  %v437_v9 = vld [vmem:[%s1954_s2 + $0x28] sm:$0xff] }
   0x4   :  { %1378 = vmatpush.msra.mxu3 %v222_v0  ;;  %518 = vperm.xlu2 %1430, %v436_v2   ;;  %v435_v10 = vld [vmem:[%s1954_s2 + $0x18] sm:$0xff] }
   0x5   :  { %508 = vperm.xlu1 %1429, %v434_v3   ;;  %498 = vperm.xlu0 %1428, %v432_v4  }
   0x6   :  { %224 = vmatpush.msra.mxu0 %v221_v5  ;;  %1379 = vmatpush.msra.mxu1 %v221_v5 }
   0x7   :  { %1380 = vmatpush.msra.mxu2 %v221_v5  ;;  %1381 = vmatpush.msra.mxu3 %v221_v5 }
   0x8   :  { %225 = vmatpush.msra.mxu0 %v220_v6  ;;  %1382 = vmatpush.msra.mxu1 %v220_v6 }
   0x9   :  { %1383 = vmatpush.msra.mxu2 %v220_v6  ;;  %1384 = vmatpush.msra.mxu3 %v220_v6 }
   0xa   :  { %226 = vmatpush.msra.mxu0 %v219_v7  ;;  %1385 = vmatpush.msra.mxu1 %v219_v7 }
   0xb   :  { %1386 = vmatpush.msra.mxu2 %v219_v7  ;;  %1387 = vmatpush.msra.mxu3 %v219_v7 }
   0xc   :  { %8 = vsyncpa [#allocation3], 0  ;;  %227 = vmatpush.msra.mxu0 %v218_v8  ;;  %1388 = vmatpush.msra.mxu1 %v218_v8  ;;  %v433_v11 = vld [vmem:[%s1954_s2 + $0x8] sm:$0xff]  ;;  %v217_v12 = vld [vmem:[%s1953_s1 + $0x50] sm:$0xff]  ;;  %s1014_s16 = sshll.u32 %s1955_s3, 4  ;;  %s1459_s17 = smov 64   ;;  %s1015_s16 = int_to_ptr.hbm [resolvable:$true] %s1014_s16 }
   0xd   :  { %1389 = vmatpush.msra.mxu2 %v218_v8  ;;  %1390 = vmatpush.msra.mxu3 %v218_v8  ;;  %v216_v13 = vld [vmem:[%s1953_s1 + $0x48] sm:$0xff]  ;;  %v215_v14 = vld [vmem:[%s1953_s1 + $0x40] sm:$0xff]  ;;  %v214_v15 = vld [vmem:[%s1953_s1 + $0x38] sm:$0xff]  ;;  %s1460_s18 = smov 4  }
   0xe   :  { %523 = vperm.xlu2 %1430, %v437_v9   ;;  %513 = vperm.xlu1 %1429, %v435_v10   ;;  %v440_v16 = vld [vmem:[%s1954_s2 + $0x40] sm:$0xff]  ;;  %v439_v17 = vld [vmem:[%s1954_s2 + $0x38] sm:$0xff]  ;;  %v438_v18 = vld [vmem:[%s1954_s2 + $0x30] sm:$0xff] }
   0xf   :  { %503 = vperm.xlu0 %1428, %v433_v11   ;;  %228 = vmatpush.msra.mxu0 %v217_v12  ;;  %v213_v19 = vld [vmem:[%s1953_s1 + $0x30] sm:$0xff]  ;;  %v212_v20 = vld [vmem:[%s1953_s1 + $0x28] sm:$0xff]  ;;  %v211_v21 = vld [vmem:[%s1953_s1 + $0x20] sm:$0xff] }
  0x10   :  { %1391 = vmatpush.msra.mxu1 %v217_v12  ;;  %1392 = vmatpush.msra.mxu2 %v217_v12  ;;  %v210_v22 = vld [vmem:[%s1953_s1 + $0x18] sm:$0xff]  ;;  %v1027_v24 = vld [vmem:[%s1952_s0] sm:$0xff]   ;;  %v442_v25 = vld [vmem:[%s1954_s2 + $0x50] sm:$0xff] }
  0x11   :  { %1393 = vmatpush.msra.mxu3 %v217_v12  ;;  %229 = vmatpush.msra.mxu0 %v216_v13  ;;  %v443_v23 = vld [vmem:[%s1954_s2 + $0x58] sm:$0xff]  ;;  %v1321_v26 = vld [vmem:[%s1952_s0 + $0x40] sm:$0xff]   ;;  %v441_v28 = vld [vmem:[%s1954_s2 + $0x48] sm:$0xff]  ;;  %v1028_v31 = vunpack.c.l.bf16 %v1027_v24  ;;  %v1029_v44 = vunpack.c.h.bf16 %v1027_v24 }
  0x12   :  { %1394 = vmatpush.msra.mxu1 %v216_v13  ;;  %1395 = vmatpush.msra.mxu2 %v216_v13  ;;  %v1329_v27 = vld [vmem:[%s1952_s0 + $0x80] sm:$0xff]   ;;  %v209_v29 = vld [vmem:[%s1953_s1 + $0x10] sm:$0xff]  ;;  %v208_v32 = vld [vmem:[%s1953_s1 + $0x8] sm:$0xff]  ;;  %v1060_v33 = vunpack.c.l.bf16 %v1321_v26  ;;  %v1061_v45 = vunpack.c.h.bf16 %v1321_v26 }
  0x13   :  { %1396 = vmatpush.msra.mxu3 %v216_v13  ;;  %230 = vmatpush.msra.mxu0 %v215_v14  ;;  %v1337_v30 = vld [vmem:[%s1952_s0 + $0xc0] sm:$0xff]   ;;  %v1092_v34 = vunpack.c.l.bf16 %v1329_v27  ;;  %v143_v37 = vmax.f32 %v1028_v31, 0.0  ;;  %v446_v41 = vld [vmem:[%s1954_s2 + $0x70] sm:$0xff]  ;;  %v445_v42 = vld [vmem:[%s1954_s2 + $0x68] sm:$0xff]  ;;  %v1093_v46 = vunpack.c.h.bf16 %v1329_v27  ;;  %v144_v48 = vmax.f32 %v1029_v44, 0.0 }
  0x14   :  { %1397 = vmatpush.msra.mxu1 %v215_v14  ;;  %1398 = vmatpush.msra.mxu2 %v215_v14  ;;  %v1124_v35 = vunpack.c.l.bf16 %v1337_v30  ;;  %v207_v36 = vld [vmem:[%s1953_s1] sm:$0xff]  ;;  %v159_v38 = vmax.f32 %v1060_v33, 0.0  ;;  %v1125_v47 = vunpack.c.h.bf16 %v1337_v30  ;;  %v160_v49 = vmax.f32 %v1061_v45, 0.0  ;;  %v1314_v51 = vld [vmem:[%s1952_s0 + $0x8] sm:$0xff]   ;;  %v447_v58 = vld [vmem:[%s1954_s2 + $0x78] sm:$0xff] }
  0x15   :  { %1399 = vmatpush.msra.mxu3 %v215_v14  ;;  %231 = vmatpush.msra.mxu0 %v214_v15  ;;  %v175_v39 = vmax.f32 %v1092_v34, 0.0  ;;  %v444_v43 = vld [vmem:[%s1954_s2 + $0x60] sm:$0xff]  ;;  %v176_v50 = vmax.f32 %v1093_v46, 0.0  ;;  %v1322_v53 = vld [vmem:[%s1952_s0 + $0x48] sm:$0xff]   ;;  %v1032_v59 = vunpack.c.l.bf16 %v1314_v51  ;;  %v451_v4 = vld [vmem:[%s1954_s2 + $0x98] sm:$0xff]  ;;  %v1033_v6 = vunpack.c.h.bf16 %v1314_v51 }
  0x16   :  { %1400 = vmatpush.msra.mxu1 %v214_v15  ;;  %1401 = vmatpush.msra.mxu2 %v214_v15  ;;  %v191_v40 = vmax.f32 %v1124_v35, 0.0  ;;  %v192_v52 = vmax.f32 %v1125_v47, 0.0  ;;  %v1330_v54 = vld [vmem:[%s1952_s0 + $0x88] sm:$0xff]   ;;  %v448_v57 = vld [vmem:[%s1954_s2 + $0x80] sm:$0xff]  ;;  %v1064_v60 = vunpack.c.l.bf16 %v1322_v53  ;;  %v450_v5 = vld [vmem:[%s1954_s2 + $0x90] sm:$0xff]  ;;  %v1065_v7 = vunpack.c.h.bf16 %v1322_v53 }
  0x17   :  { %1402 = vmatpush.msra.mxu3 %v214_v15  ;;  %538 = vperm.xlu2 %1430, %v440_v16   ;;  %v449_v55 = vld [vmem:[%s1954_s2 + $0x88] sm:$0xff]  ;;  %v1096_v61 = vunpack.c.l.bf16 %v1330_v54  ;;  %v145_v63 = vmax.f32 %v1032_v59, 0.0  ;;  %v452_v3 = vld [vmem:[%s1954_s2 + $0xa0] sm:$0xff]  ;;  %v1097_v8 = vunpack.c.h.bf16 %v1330_v54  ;;  %v146_v10 = vmax.f32 %v1033_v6, 0.0  ;;  %v1315_v13 = vld [vmem:[%s1952_s0 + $0x10] sm:$0xff]  }
  0x18   :  { %533 = vperm.xlu1 %1429, %v439_v17   ;;  %528 = vperm.xlu0 %1428, %v438_v18   ;;  %v1338_v56 = vld [vmem:[%s1952_s0 + $0xc8] sm:$0xff]   ;;  %v161_v0 = vmax.f32 %v1064_v60, 0.0  ;;  %v162_v11 = vmax.f32 %v1065_v7, 0.0  ;;  %v1323_v15 = vld [vmem:[%s1952_s0 + $0x50] sm:$0xff]   ;;  %v455_v17 = vld [vmem:[%s1954_s2 + $0xb8] sm:$0xff] }
  0x19   :  { %232 = vmatpush.msra.mxu0 %v213_v19  ;;  %1403 = vmatpush.msra.mxu1 %v213_v19  ;;  %v1128_v62 = vunpack.c.l.bf16 %v1338_v56  ;;  %v177_v1 = vmax.f32 %v1096_v61, 0.0  ;;  %v1129_v9 = vunpack.c.h.bf16 %v1338_v56  ;;  %v178_v12 = vmax.f32 %v1097_v8, 0.0  ;;  %v1331_v16 = vld [vmem:[%s1952_s0 + $0x90] sm:$0xff]   ;;  %v457_v30 = vld [vmem:[%s1954_s2 + $0xc8] sm:$0xff]  ;;  %v456_v31 = vld [vmem:[%s1954_s2 + $0xc0] sm:$0xff] }
  0x1a   :  { %1404 = vmatpush.msra.mxu2 %v213_v19  ;;  %1405 = vmatpush.msra.mxu3 %v213_v19  ;;  %v1339_v18 = vld [vmem:[%s1952_s0 + $0xd0] sm:$0xff]   ;;  %v1069_v33 = vunpack.c.h.bf16 %v1323_v15  ;;  %v1101_v34 = vunpack.c.h.bf16 %v1331_v16  ;;  %v1340_v44 = vld [vmem:[%s1952_s0 + $0xd8] sm:$0xff]   ;;  %v460_v45 = vld [vmem:[%s1954_s2 + $0xe0] sm:$0xff] }
  0x1b   :  { %233 = vmatpush.msra.mxu0 %v212_v20  ;;  %1406 = vmatpush.msra.mxu1 %v212_v20  ;;  %v193_v2 = vmax.f32 %v1128_v62, 0.0  ;;  %v194_v14 = vmax.f32 %v1129_v9, 0.0  ;;  %v454_v19 = vld [vmem:[%s1954_s2 + $0xb0] sm:$0xff]  ;;  %v1132_v24 = vunpack.c.l.bf16 %v1339_v18  ;;  %v1133_v35 = vunpack.c.h.bf16 %v1339_v18  ;;  %v459_v46 = vld [vmem:[%s1954_s2 + $0xd8] sm:$0xff]  ;;  %v1341_v7 = vld [vmem:[%s1952_s0 + $0xe0] sm:$0xff]  }
  0x1c   :  { %1407 = vmatpush.msra.mxu2 %v212_v20  ;;  %1408 = vmatpush.msra.mxu3 %v212_v20  ;;  %v453_v20 = vld [vmem:[%s1954_s2 + $0xa8] sm:$0xff]  ;;  %v463_v56 = vld [vmem:[%s1954_s2 + $0xf8] sm:$0xff]  ;;  %v1137_v61 = vunpack.c.h.bf16 %v1340_v44  ;;  %v466_v8 = vld [vmem:[%s1954_s2 + $0x110] sm:$0xff] }
  0x1d   :  { %234 = vmatpush.msra.mxu0 %v211_v21  ;;  %1409 = vmatpush.msra.mxu1 %v211_v21  ;;  %v467_v6 = vld [vmem:[%s1954_s2 + $0x118] sm:$0xff]  ;;  %v465_v9 = vld [vmem:[%s1954_s2 + $0x108] sm:$0xff]  ;;  %v470_v18 = vld [vmem:[%s1954_s2 + $0x130] sm:$0xff] }
  0x1e   :  { %1410 = vmatpush.msra.mxu2 %v211_v21  ;;  %1411 = vmatpush.msra.mxu3 %v211_v21  ;;  %v1036_v21 = vunpack.c.l.bf16 %v1315_v13 }
  0x1f   :  { %235 = vmatpush.msra.mxu0 %v210_v22  ;;  %1412 = vmatpush.msra.mxu1 %v210_v22 }
  0x20   :  { %1413 = vmatpush.msra.mxu2 %v210_v22  ;;  %1414 = vmatpush.msra.mxu3 %v210_v22  ;;  %v1068_v22 = vunpack.c.l.bf16 %v1323_v15 }
  0x21   :  { %553 = vperm.xlu2 %1430, %v443_v23   ;;  %548 = vperm.xlu1 %1429, %v442_v25   ;;  %v1100_v23 = vunpack.c.l.bf16 %v1331_v16  ;;  %v147_v25 = vmax.f32 %v1036_v21, 0.0 }
  0x22   :  { %543 = vperm.xlu0 %1428, %v441_v28   ;;  %236 = vmatpush.msra.mxu0 %v209_v29  ;;  %v163_v26 = vmax.f32 %v1068_v22, 0.0  ;;  %v195_v28 = vmax.f32 %v1132_v24, 0.0 }
  0x23   :  { %1415 = vmatpush.msra.mxu1 %v209_v29  ;;  %1416 = vmatpush.msra.mxu2 %v209_v29  ;;  %v179_v27 = vmax.f32 %v1100_v23, 0.0 }
  0x24   :  { %1417 = vmatpush.msra.mxu3 %v209_v29  ;;  %237 = vmatpush.msra.mxu0 %v208_v32  ;;  %v458_v29 = vld [vmem:[%s1954_s2 + $0xd0] sm:$0xff] }
  0x25   :  { %1418 = vmatpush.msra.mxu1 %v208_v32  ;;  %1419 = vmatpush.msra.mxu2 %v208_v32 }
  0x26   :  { %1420 = vmatpush.msra.mxu3 %v208_v32  ;;  %238 = vmatpush.msra.mxu0 %v207_v36  ;;  %v1037_v32 = vunpack.c.h.bf16 %v1315_v13  ;;  %v1140_v13 = vunpack.c.l.bf16 %v1341_v7 }
  0x27   :  { %1421 = vmatpush.msra.mxu1 %v207_v36  ;;  %1422 = vmatpush.msra.mxu2 %v207_v36 }
  0x28   :  { %1423 = vmatpush.msra.mxu3 %v207_v36  ;;  %239 = vmatmul.f32.vlgmr.msra.gmra.mxu0 %v143_v37  ;;  %v148_v36 = vmax.f32 %v1037_v32, 0.0  ;;  %v164_v37 = vmax.f32 %v1069_v33, 0.0  ;;  %v1334_v32 = vld [vmem:[%s1952_s0 + $0xa8] sm:$0xff]  }
  0x29   :  { %287 = vmatmul.f32.vlgmr.msra.gmra.mxu1 %v159_v38  ;;  %335 = vmatmul.f32.vlgmr.msra.gmra.mxu2 %v175_v39  ;;  %v180_v38 = vmax.f32 %v1101_v34, 0.0  ;;  %v1316_v39 = vld [vmem:[%s1952_s0 + $0x18] sm:$0xff]   ;;  %v473_v33 = vld [vmem:[%s1954_s2 + $0x148] sm:$0xff] }
  0x2a   :  { %383 = vmatmul.f32.vlgmr.msra.gmra.mxu3 %v191_v40  ;;  %568 = vperm.xlu2 %1430, %v446_v41   ;;  %v196_v40 = vmax.f32 %v1133_v35, 0.0  ;;  %v1324_v41 = vld [vmem:[%s1952_s0 + $0x58] sm:$0xff]   ;;  %v1040_v47 = vunpack.c.l.bf16 %v1316_v39  ;;  %v1342_v34 = vld [vmem:[%s1952_s0 + $0xe8] sm:$0xff]   ;;  %v472_v35 = vld [vmem:[%s1954_s2 + $0x140] sm:$0xff] }
  0x2b   :  { %563 = vperm.xlu1 %1429, %v445_v42   ;;  %558 = vperm.xlu0 %1428, %v444_v43   ;;  %v1332_v42 = vld [vmem:[%s1952_s0 + $0x98] sm:$0xff]   ;;  %v461_v43 = vld [vmem:[%s1954_s2 + $0xe8] sm:$0xff]  ;;  %v1073_v59 = vunpack.c.h.bf16 %v1324_v41 }
  0x2c   :  { %v149_v51 = vmax.f32 %v1040_v47, 0.0  ;;  %v1105_v60 = vunpack.c.h.bf16 %v1332_v42 }
  0x30   :  { %242 = vmatmul.f32.gmra.mxu0 %v144_v48  ;;  %v1072_v48 = vunpack.c.l.bf16 %v1324_v41  ;;  %v1144_v41 = vunpack.c.l.bf16 %v1342_v34 }
  0x31   :  { %290 = vmatmul.f32.gmra.mxu1 %v160_v49  ;;  %338 = vmatmul.f32.gmra.mxu2 %v176_v50  ;;  %v1104_v49 = vunpack.c.l.bf16 %v1332_v42  ;;  %v1136_v50 = vunpack.c.l.bf16 %v1340_v44 }
  0x32   :  { %386 = vmatmul.f32.gmra.mxu3 %v192_v52  ;;  %583 = vperm.xlu2 %1430, %v449_v55   ;;  %v165_v52 = vmax.f32 %v1072_v48, 0.0  ;;  %v464_v55 = vld [vmem:[%s1954_s2 + $0x100] sm:$0xff] }
  0x33   :  { %578 = vperm.xlu1 %1429, %v448_v57   ;;  %573 = vperm.xlu0 %1428, %v447_v58   ;;  %v181_v53 = vmax.f32 %v1104_v49, 0.0  ;;  %v197_v54 = vmax.f32 %v1136_v50, 0.0  ;;  %v462_v57 = vld [vmem:[%s1954_s2 + $0xf0] sm:$0xff]  ;;  %v1041_v58 = vunpack.c.h.bf16 %v1316_v39  ;;  %v475_v49 = vld [vmem:[%s1954_s2 + $0x158] sm:$0xff] }
  0x34   :  { %v474_v50 = vld [vmem:[%s1954_s2 + $0x150] sm:$0xff] }
  0x35   :  { %v150_v62 = vmax.f32 %v1041_v58, 0.0 }
  0x38   :  { %245 = vmatmul.f32.gmra.mxu0 %v145_v63  ;;  %v166_v63 = vmax.f32 %v1073_v59, 0.0  ;;  %v1319_v59 = vld [vmem:[%s1952_s0 + $0x30] sm:$0xff]  }
  0x39   :  { %293 = vmatmul.f32.gmra.mxu1 %v161_v0  ;;  %341 = vmatmul.f32.gmra.mxu2 %v177_v1  ;;  %v182_v0 = vmax.f32 %v1105_v60, 0.0  ;;  %v1317_v1 = vld [vmem:[%s1952_s0 + $0x20] sm:$0xff]  }
  0x3a   :  { %389 = vmatmul.f32.gmra.mxu3 %v193_v2  ;;  %598 = vperm.xlu2 %1430, %v452_v3   ;;  %v198_v2 = vmax.f32 %v1137_v61, 0.0  ;;  %v1045_v22 = vunpack.c.h.bf16 %v1317_v1  ;;  %v1327_v61 = vld [vmem:[%s1952_s0 + $0x70] sm:$0xff]  }
  0x3b   :  { %593 = vperm.xlu1 %1429, %v451_v4   ;;  %588 = vperm.xlu0 %1428, %v450_v5   ;;  %v1325_v4 = vld [vmem:[%s1952_s0 + $0x60] sm:$0xff]  }
  0x3c   :  { %v1333_v5 = vld [vmem:[%s1952_s0 + $0xa0] sm:$0xff]   ;;  %v1077_v23 = vunpack.c.h.bf16 %v1325_v4 }
  0x3d   :  { %v1109_v24 = vunpack.c.h.bf16 %v1333_v5 }
  0x40   :  { %248 = vmatmul.f32.gmra.mxu0 %v146_v10  ;;  %v1044_v10 = vunpack.c.l.bf16 %v1317_v1  ;;  %v478_v1 = vld [vmem:[%s1954_s2 + $0x170] sm:$0xff] }
  0x41   :  { %296 = vmatmul.f32.gmra.mxu1 %v162_v11  ;;  %344 = vmatmul.f32.gmra.mxu2 %v178_v12  ;;  %v1076_v11 = vunpack.c.l.bf16 %v1325_v4  ;;  %v1108_v12 = vunpack.c.l.bf16 %v1333_v5  ;;  %v1052_v5 = vunpack.c.l.bf16 %v1319_v59 }
  0x42   :  { %392 = vmatmul.f32.gmra.mxu3 %v194_v14  ;;  %613 = vperm.xlu2 %1430, %v455_v17   ;;  %v151_v14 = vmax.f32 %v1044_v10, 0.0  ;;  %v199_v17 = vmax.f32 %v1140_v13, 0.0 }
  0x43   :  { %608 = vperm.xlu1 %1429, %v454_v19   ;;  %603 = vperm.xlu0 %1428, %v453_v20   ;;  %v167_v15 = vmax.f32 %v1076_v11, 0.0  ;;  %v183_v16 = vmax.f32 %v1108_v12, 0.0  ;;  %v469_v19 = vld [vmem:[%s1954_s2 + $0x128] sm:$0xff]  ;;  %v468_v20 = vld [vmem:[%s1954_s2 + $0x120] sm:$0xff]  ;;  %v155_v11 = vmax.f32 %v1052_v5, 0.0  ;;  %v490_v5 = vld [vmem:[%s1954_s2 + $0x1d0] sm:$0xff] }
  0x48   :  { %251 = vmatmul.f32.gmra.mxu0 %v147_v25  ;;  %v1141_v25 = vunpack.c.h.bf16 %v1341_v7  ;;  %v1084_v7 = vunpack.c.l.bf16 %v1327_v61 }
  0x49   :  { %299 = vmatmul.f32.gmra.mxu1 %v163_v26  ;;  %347 = vmatmul.f32.gmra.mxu2 %v179_v27  ;;  %v152_v26 = vmax.f32 %v1045_v22, 0.0  ;;  %v168_v27 = vmax.f32 %v1077_v23, 0.0 }
  0x4a   :  { %395 = vmatmul.f32.gmra.mxu3 %v195_v28  ;;  %628 = vperm.xlu2 %1430, %v458_v29   ;;  %v184_v28 = vmax.f32 %v1109_v24, 0.0  ;;  %v1318_v29 = vld [vmem:[%s1952_s0 + $0x28] sm:$0xff]   ;;  %v171_v12 = vmax.f32 %v1084_v7, 0.0 }
  0x4b   :  { %623 = vperm.xlu1 %1429, %v457_v30   ;;  %618 = vperm.xlu0 %1428, %v456_v31   ;;  %v200_v30 = vmax.f32 %v1141_v25, 0.0  ;;  %v1326_v31 = vld [vmem:[%s1952_s0 + $0x68] sm:$0xff]  }
  0x4c   :  { %v1080_v39 = vunpack.c.l.bf16 %v1326_v31  ;;  %v489_v7 = vld [vmem:[%s1954_s2 + $0x1c8] sm:$0xff] }
  0x50   :  { %254 = vmatmul.f32.gmra.mxu0 %v148_v36  ;;  %v471_v36 = vld [vmem:[%s1954_s2 + $0x138] sm:$0xff] }
  0x51   :  { %302 = vmatmul.f32.gmra.mxu1 %v164_v37  ;;  %350 = vmatmul.f32.gmra.mxu2 %v180_v38  ;;  %v1048_v37 = vunpack.c.l.bf16 %v1318_v29 }
  0x52   :  { %398 = vmatmul.f32.gmra.mxu3 %v196_v40  ;;  %643 = vperm.xlu2 %1430, %v461_v43   ;;  %v1112_v40 = vunpack.c.l.bf16 %v1334_v32  ;;  %v169_v43 = vmax.f32 %v1080_v39, 0.0 }
  0x53   :  { %638 = vperm.xlu1 %1429, %v460_v45   ;;  %633 = vperm.xlu0 %1428, %v459_v46   ;;  %v153_v42 = vmax.f32 %v1048_v37, 0.0  ;;  %v201_v45 = vmax.f32 %v1144_v41, 0.0  ;;  %v476_v46 = vld [vmem:[%s1954_s2 + $0x160] sm:$0xff] }
  0x54   :  { %v185_v44 = vmax.f32 %v1112_v40, 0.0 }
  0x58   :  { %257 = vmatmul.f32.gmra.mxu0 %v149_v51  ;;  %v1049_v51 = vunpack.c.h.bf16 %v1318_v29  ;;  %v1320_v29 = vld [vmem:[%s1952_s0 + $0x38] sm:$0xff]  }
  0x59   :  { %305 = vmatmul.f32.gmra.mxu1 %v165_v52  ;;  %353 = vmatmul.f32.gmra.mxu2 %v181_v53  ;;  %v1081_v52 = vunpack.c.h.bf16 %v1326_v31  ;;  %v1113_v53 = vunpack.c.h.bf16 %v1334_v32  ;;  %v1328_v31 = vld [vmem:[%s1952_s0 + $0x78] sm:$0xff]   ;;  %v1056_v37 = vunpack.c.l.bf16 %v1320_v29 }
  0x5a   :  { %401 = vmatmul.f32.gmra.mxu3 %v197_v54  ;;  %658 = vperm.xlu2 %1430, %v464_v55   ;;  %v1145_v54 = vunpack.c.h.bf16 %v1342_v34  ;;  %v1336_v32 = vld [vmem:[%s1952_s0 + $0xb8] sm:$0xff]   ;;  %v1088_v39 = vunpack.c.l.bf16 %v1328_v31 }
  0x5b   :  { %653 = vperm.xlu1 %1429, %v463_v56   ;;  %648 = vperm.xlu0 %1428, %v462_v57   ;;  %v154_v56 = vmax.f32 %v1049_v51, 0.0  ;;  %v170_v57 = vmax.f32 %v1081_v52, 0.0  ;;  %v186_v58 = vmax.f32 %v1113_v53, 0.0  ;;  %v1344_v34 = vld [vmem:[%s1952_s0 + $0xf8] sm:$0xff]   ;;  %v1120_v40 = vunpack.c.l.bf16 %v1336_v32  ;;  %v488_v51 = vld [vmem:[%s1954_s2 + $0x1c0] sm:$0xff]  ;;  %v486_v53 = vld [vmem:[%s1954_s2 + $0x1b0] sm:$0xff] }
  0x5c   :  { %v202_v60 = vmax.f32 %v1145_v54, 0.0  ;;  %v1152_v41 = vunpack.c.l.bf16 %v1344_v34  ;;  %v487_v52 = vld [vmem:[%s1954_s2 + $0x1b8] sm:$0xff]  ;;  %v1057_v54 = vunpack.c.h.bf16 %v1320_v29 }
  0x5e   :  { %v1679_v3 = vpop.permute.xlu2 %518 }
  0x60   :  { %260 = vmatmul.f32.gmra.mxu0 %v150_v62  ;;  %v1335_v62 = vld [vmem:[%s1952_s0 + $0xb0] sm:$0xff]  }
  0x61   :  { %308 = vmatmul.f32.gmra.mxu1 %v166_v63  ;;  %356 = vmatmul.f32.gmra.mxu2 %v182_v0  ;;  %v479_v63 = vld [vmem:[%s1954_s2 + $0x178] sm:$0xff]  ;;  %v1343_v0 = vld [vmem:[%s1952_s0 + $0xf0] sm:$0xff]  }
  0x62   :  { %404 = vmatmul.f32.gmra.mxu3 %v198_v2  ;;  %673 = vperm.xlu2 %1430, %v467_v6   ;;  %v477_v2 = vld [vmem:[%s1954_s2 + $0x168] sm:$0xff]  ;;  %v1149_v24 = vunpack.c.h.bf16 %v1343_v0 }
  0x63   :  { %668 = vperm.xlu1 %1429, %v466_v8   ;;  %663 = vperm.xlu0 %1428, %v465_v9   ;;  %v1116_v8 = vunpack.c.l.bf16 %v1335_v62  ;;  %v1148_v9 = vunpack.c.l.bf16 %v1343_v0 }
  0x65   :  { %v187_v13 = vmax.f32 %v1116_v8, 0.0 }
  0x68   :  { %263 = vmatmul.f32.gmra.mxu0 %v151_v14  ;;  %v1708_v21 = vpop.permute.xlu2 %523  ;;  %v203_v14 = vmax.f32 %v1148_v9, 0.0 }
  0x69   :  { %311 = vmatmul.f32.gmra.mxu1 %v167_v15  ;;  %359 = vmatmul.f32.gmra.mxu2 %v183_v16  ;;  %v482_v15 = vld [vmem:[%s1954_s2 + $0x190] sm:$0xff]  ;;  %v481_v16 = vld [vmem:[%s1954_s2 + $0x188] sm:$0xff] }
  0x6a   :  { %407 = vmatmul.f32.gmra.mxu3 %v199_v17  ;;  %688 = vperm.xlu2 %1430, %v470_v18   ;;  %v480_v17 = vld [vmem:[%s1954_s2 + $0x180] sm:$0xff]  ;;  %v1053_v18 = vunpack.c.h.bf16 %v1319_v59 }
  0x6b   :  { %683 = vperm.xlu1 %1429, %v469_v19   ;;  %678 = vperm.xlu0 %1428, %v468_v20   ;;  %v1085_v19 = vunpack.c.h.bf16 %v1327_v61  ;;  %v1117_v20 = vunpack.c.h.bf16 %v1335_v62 }
  0x70   :  { %266 = vmatmul.f32.gmra.mxu0 %v152_v26  ;;  %v156_v26 = vmax.f32 %v1053_v18, 0.0 }
  0x71   :  { %314 = vmatmul.f32.gmra.mxu1 %v168_v27  ;;  %362 = vmatmul.f32.gmra.mxu2 %v184_v28  ;;  %v1731_v38 = vpop.permute.xlu2 %538  ;;  %v172_v27 = vmax.f32 %v1085_v19, 0.0  ;;  %v188_v28 = vmax.f32 %v1117_v20, 0.0 }
  0x72   :  { %410 = vmatmul.f32.gmra.mxu3 %v200_v30  ;;  %703 = vperm.xlu2 %1430, %v473_v33   ;;  %v204_v30 = vmax.f32 %v1149_v24, 0.0  ;;  %v485_v33 = vld [vmem:[%s1954_s2 + $0x1a8] sm:$0xff] }
  0x73   :  { %698 = vperm.xlu1 %1429, %v472_v35   ;;  %693 = vperm.xlu0 %1428, %v471_v36   ;;  %v484_v35 = vld [vmem:[%s1954_s2 + $0x1a0] sm:$0xff]  ;;  %v483_v36 = vld [vmem:[%s1954_s2 + $0x198] sm:$0xff] }
  0x77   :  { %v1736_v47 = vpop.permute.xlu1 %508  ;;  %v1738_v48 = vpop.permute.xlu0 %498 }
  0x78   :  { %269 = vmatmul.f32.gmra.mxu0 %v153_v42 }
  0x79   :  { %317 = vmatmul.f32.gmra.mxu1 %v169_v43  ;;  %365 = vmatmul.f32.gmra.mxu2 %v185_v44 }
  0x7a   :  { %413 = vmatmul.f32.gmra.mxu3 %v201_v45  ;;  %718 = vperm.xlu2 %1430, %v476_v46   ;;  %v157_v45 = vmax.f32 %v1056_v37, 0.0  ;;  %v173_v46 = vmax.f32 %v1088_v39, 0.0 }
  0x7b   :  { %713 = vperm.xlu1 %1429, %v475_v49   ;;  %708 = vperm.xlu0 %1428, %v474_v50   ;;  %v1746_v55 = vpop.permute.xlu2 %553  ;;  %v189_v49 = vmax.f32 %v1120_v40, 0.0  ;;  %v205_v50 = vmax.f32 %v1152_v41, 0.0 }
  0x80   :  { %272 = vmatmul.f32.gmra.mxu0 %v154_v56  ;;  %v1769_v4 = vpop.permute.xlu1 %513  ;;  %v1089_v56 = vunpack.c.h.bf16 %v1328_v31 }
  0x81   :  { %320 = vmatmul.f32.gmra.mxu1 %v170_v57  ;;  %368 = vmatmul.f32.gmra.mxu2 %v186_v58  ;;  %v1771_v6 = vpop.permute.xlu0 %503  ;;  %v1121_v57 = vunpack.c.h.bf16 %v1336_v32  ;;  %v1153_v58 = vunpack.c.h.bf16 %v1344_v34  ;;  %v495_v32 = vld [vmem:[%s1954_s2 + $0x1f8] sm:$0xff] }
  0x82   :  { %416 = vmatmul.f32.gmra.mxu3 %v202_v60  ;;  %733 = vperm.xlu2 %1430, %v479_v63   ;;  %v158_v60 = vmax.f32 %v1057_v54, 0.0  ;;  %v174_v63 = vmax.f32 %v1089_v56, 0.0 }
  0x83   :  { %728 = vperm.xlu1 %1429, %v478_v1   ;;  %723 = vperm.xlu0 %1428, %v477_v2   ;;  %v190_v0 = vmax.f32 %v1121_v57, 0.0  ;;  %v206_v1 = vmax.f32 %v1153_v58, 0.0  ;;  %v491_v2 = vld [vmem:[%s1954_s2 + $0x1d8] sm:$0xff] }
  0x84   :  { %v1773_v10 = vpop.permute.xlu2 %568 }
  0x88   :  { %275 = vmatmul.f32.gmra.mxu0 %v155_v11 }
  0x89   :  { %323 = vmatmul.f32.gmra.mxu1 %v171_v12  ;;  %371 = vmatmul.f32.gmra.mxu2 %v187_v13 }
  0x8a   :  { %419 = vmatmul.f32.gmra.mxu3 %v203_v14  ;;  %748 = vperm.xlu2 %1430, %v482_v15   ;;  %v1784_v22 = vpop.permute.xlu1 %533  ;;  %v1786_v23 = vpop.permute.xlu0 %528  ;;  %v494_v14 = vld [vmem:[%s1954_s2 + $0x1f0] sm:$0xff]  ;;  %v493_v15 = vld [vmem:[%s1954_s2 + $0x1e8] sm:$0xff] }
  0x8b   :  { %743 = vperm.xlu1 %1429, %v481_v16   ;;  %738 = vperm.xlu0 %1428, %v480_v17   ;;  %v492_v16 = vld [vmem:[%s1954_s2 + $0x1e0] sm:$0xff]  ;;  %s1458_s2 = smov [#allocation2]  }
  0x8c   :  { %v1788_v25 = vpop.permute.xlu2 %583  ;;  %s1012_s13 = sshll.u32 %s1458_s2, 4  ;;  %s1013_s13 = int_to_ptr.vmem [resolvable:$true] %s1012_s13 }
  0x90   :  { %278 = vmatmul.f32.gmra.mxu0 %v156_v26 }
  0x91   :  { %326 = vmatmul.f32.gmra.mxu1 %v172_v27  ;;  %374 = vmatmul.f32.gmra.mxu2 %v188_v28 }
  0x92   :  { %422 = vmatmul.f32.gmra.mxu3 %v204_v30  ;;  %763 = vperm.xlu2 %1430, %v485_v33  }
  0x93   :  { %758 = vperm.xlu1 %1429, %v484_v35   ;;  %753 = vperm.xlu0 %1428, %v483_v36   ;;  %v1811_v42 = vpop.permute.xlu1 %548 }
  0x94   :  { %v1813_v43 = vpop.permute.xlu2 %598  ;;  %v1815_v44 = vpop.permute.xlu0 %543 }
  0x98   :  { %281 = vmatmul.f32.gmra.mxu0 %v157_v45 }
  0x99   :  { %329 = vmatmul.f32.gmra.mxu1 %v173_v46  ;;  %377 = vmatmul.f32.gmra.mxu2 %v189_v49 }
  0x9a   :  { %425 = vmatmul.f32.gmra.mxu3 %v205_v50  ;;  %778 = vperm.xlu2 %1430, %v488_v51  }
  0x9b   :  { %773 = vperm.xlu1 %1429, %v487_v52   ;;  %768 = vperm.xlu0 %1428, %v486_v53  }
  0x9c   :  { %v1826_v59 = vpop.permute.xlu2 %613 }
  0x9d   :  { %v1828_v61 = vpop.permute.xlu1 %563  ;;  %v1830_v62 = vpop.permute.xlu0 %558 }
  0xa0   :  { %284 = vmatmul.f32.gmra.mxu0 %v158_v60 }
  0xa1   :  { %332 = vmatmul.f32.gmra.mxu1 %v174_v63  ;;  %380 = vmatmul.f32.gmra.mxu2 %v190_v0 }
  0xa2   :  { %428 = vmatmul.f32.gmra.mxu3 %v206_v1  ;;  %793 = vperm.xlu2 %1430, %v491_v2  }
  0xa3   :  { %788 = vperm.xlu1 %1429, %v490_v5   ;;  %783 = vperm.xlu0 %1428, %v489_v7  }
  0xa4   :  { %v1841_v8 = vpop.permute.xlu2 %628 }
  0xa5   :  { %v579_v9 = vpop.permute.xlu1 %578  ;;  %v1843_v11 = vpop.permute.xlu0 %573 }
  0xa6   :  { %v240_v12 = vpop.f32.mrf.mxu0  ;;  %v288_v13 = vpop.f32.mrf.mxu1 }
  0xa7   :  { %v816_v27 = vmul.f32 %v1738_v48, %v240_v12  ;;  %v832_v30 = vmul.f32 %v579_v9, %v288_v13 }
  0xaa   :  { %808 = vperm.xlu2 %1430, %v494_v14  }
  0xab   :  { %803 = vperm.xlu1 %1429, %v493_v15   ;;  %798 = vperm.xlu0 %1428, %v492_v16  }
  0xac   :  { %v1854_v17 = vpop.f32.mrf.mxu2  ;;  %v1856_v18 = vpop.permute.xlu2 %643 }
  0xad   :  { %v1858_v19 = vpop.f32.mrf.mxu3  ;;  %v594_v20 = vpop.permute.xlu1 %593 }
  0xae   :  { %v589_v24 = vpop.permute.xlu0 %588  ;;  %v243_v26 = vpop.f32.mrf.mxu0 }
  0xaf   :  { %v817_v28 = vmul.f32 %v1771_v6, %v243_v26  ;;  %v291_v29 = vpop.f32.mrf.mxu1 }
  0xb0   :  { %v833_v31 = vmul.f32 %v1788_v25, %v291_v29 }
  0xb1   :  { %v1157_v33 = vpack.c.bf16 %v817_v28, %v816_v27 }
  0xb2   :  { %v1197_v34 = vpack.c.bf16 %v833_v31, %v832_v30 }
  0xb3   :  { %1158 = vst [vmem:[#allocation2] sm:$0xff] %v1157_v33   ;;  %813 = vperm.xlu0 %1428, %v495_v32  }
  0xb4   :  { %1352 = vst [vmem:[#allocation2 + $0x40] sm:$0xff] %v1197_v34   ;;  %v339_v35 = vpop.f32.mrf.mxu2  ;;  %v659_v36 = vpop.permute.xlu2 %658 }
  0xb5   :  { %v1866_v37 = vpop.f32.mrf.mxu3  ;;  %v1868_v48 = vpop.permute.xlu1 %608 }
  0xb6   :  { %v604_v6 = vpop.permute.xlu0 %603  ;;  %v246_v39 = vpop.f32.mrf.mxu0 }
  0xb7   :  { %v294_v40 = vpop.f32.mrf.mxu1  ;;  %v818_v50 = vmul.f32 %v1736_v47, %v246_v39 }
  0xb8   :  { %v834_v53 = vmul.f32 %v589_v24, %v294_v40 }
  0xbc   :  { %v342_v41 = vpop.f32.mrf.mxu2  ;;  %v674_v54 = vpop.permute.xlu2 %673 }
  0xbd   :  { %v1870_v25 = vpop.f32.mrf.mxu3  ;;  %v1872_v45 = vpop.permute.xlu1 %623 }
  0xbe   :  { %v1874_v46 = vpop.permute.xlu0 %618  ;;  %v249_v49 = vpop.f32.mrf.mxu0 }
  0xbf   :  { %v819_v51 = vmul.f32 %v1769_v4, %v249_v49  ;;  %v297_v52 = vpop.f32.mrf.mxu1 }
  0xc0   :  { %v835_v56 = vmul.f32 %v594_v20, %v297_v52 }
  0xc1   :  { %v1162_v57 = vpack.c.bf16 %v819_v51, %v818_v50 }
  0xc2   :  { %v1202_v58 = vpack.c.bf16 %v835_v56, %v834_v53 }
  0xc3   :  { %1345 = vst [vmem:[#allocation2 + $0x8] sm:$0xff] %v1162_v57  }
  0xc4   :  { %1353 = vst [vmem:[#allocation2 + $0x48] sm:$0xff] %v1202_v58   ;;  %v345_v60 = vpop.f32.mrf.mxu2  ;;  %v689_v47 = vpop.permute.xlu2 %688 }
  0xc5   :  { %v1878_v63 = vpop.f32.mrf.mxu3  ;;  %v1880_v0 = vpop.permute.xlu1 %638  ;;  %v851_v32 = vmul.f32 %v674_v54, %v345_v60 }
  0xc6   :  { %v1882_v1 = vpop.permute.xlu0 %633  ;;  %v252_v2 = vpop.f32.mrf.mxu0 }
  0xc7   :  { %v300_v5 = vpop.f32.mrf.mxu1  ;;  %v820_v14 = vmul.f32 %v1679_v3, %v252_v2 }
  0xc8   :  { %v836_v20 = vmul.f32 %v1813_v43, %v300_v5 }
  0xcc   :  { %v348_v7 = vpop.f32.mrf.mxu2  ;;  %v1893_v28 = vpop.permute.xlu2 %703 }
  0xcd   :  { %v1884_v4 = vpop.f32.mrf.mxu3  ;;  %v1886_v9 = vpop.permute.xlu1 %653 }
  0xce   :  { %v1888_v12 = vpop.permute.xlu0 %648  ;;  %v255_v13 = vpop.f32.mrf.mxu0 }
  0xcf   :  { %v821_v15 = vmul.f32 %v1708_v21, %v255_v13  ;;  %v303_v16 = vpop.f32.mrf.mxu1  ;;  %v848_v21 = vmul.f32 %v659_v36, %v1854_v17 }
  0xd0   :  { %v837_v24 = vmul.f32 %v604_v6, %v303_v16 }
  0xd1   :  { %v1167_v26 = vpack.c.bf16 %v821_v15, %v820_v14 }
  0xd2   :  { %v1207_v27 = vpack.c.bf16 %v837_v24, %v836_v20 }
  0xd3   :  { %1346 = vst [vmem:[#allocation2 + $0x10] sm:$0xff] %v1167_v26  }
  0xd4   :  { %1354 = vst [vmem:[#allocation2 + $0x50] sm:$0xff] %v1207_v27   ;;  %v351_v29 = vpop.f32.mrf.mxu2  ;;  %v1902_v17 = vpop.permute.xlu2 %718 }
  0xd5   :  { %v1895_v30 = vpop.f32.mrf.mxu3  ;;  %v669_v31 = vpop.permute.xlu1 %668 }
  0xd6   :  { %v850_v33 = vmul.f32 %v669_v31, %v342_v41  ;;  %v664_v34 = vpop.permute.xlu0 %663  ;;  %v258_v3 = vpop.f32.mrf.mxu0 }
  0xd7   :  { %v849_v39 = vmul.f32 %v664_v34, %v339_v35  ;;  %v306_v40 = vpop.f32.mrf.mxu1  ;;  %v822_v54 = vmul.f32 %v1786_v23, %v258_v3 }
  0xd8   :  { %v1242_v43 = vpack.c.bf16 %v851_v32, %v850_v33  ;;  %v838_v35 = vmul.f32 %v1868_v48, %v306_v40 }
  0xd9   :  { %v1237_v6 = vpack.c.bf16 %v849_v39, %v848_v21 }
  0xda   :  { %1361 = vst [vmem:[#allocation2 + $0x88] sm:$0xff] %v1242_v43  }
  0xdb   :  { %1360 = vst [vmem:[#allocation2 + $0x80] sm:$0xff] %v1237_v6  }
  0xdc   :  { %v354_v49 = vpop.f32.mrf.mxu2  ;;  %v1908_v26 = vpop.permute.xlu2 %733 }
  0xdd   :  { %v1898_v50 = vpop.f32.mrf.mxu3  ;;  %v684_v51 = vpop.permute.xlu1 %683 }
  0xde   :  { %v853_v52 = vmul.f32 %v684_v51, %v351_v29  ;;  %v679_v53 = vpop.permute.xlu0 %678  ;;  %v261_v56 = vpop.f32.mrf.mxu0 }
  0xdf   :  { %v852_v41 = vmul.f32 %v679_v53, %v348_v7  ;;  %v823_v57 = vmul.f32 %v1784_v22, %v261_v56  ;;  %v309_v58 = vpop.f32.mrf.mxu1  ;;  %v854_v22 = vmul.f32 %v689_v47, %v354_v49 }
  0xe0   :  { %v839_v36 = vmul.f32 %v1826_v59, %v309_v58 }
  0xe1   :  { %v1247_v60 = vpack.c.bf16 %v853_v52, %v852_v41  ;;  %v1172_v2 = vpack.c.bf16 %v823_v57, %v822_v54 }
  0xe2   :  { %v1212_v5 = vpack.c.bf16 %v839_v36, %v838_v35 }
  0xe3   :  { %1362 = vst [vmem:[#allocation2 + $0x90] sm:$0xff] %v1247_v60  }
  0xe4   :  { %1347 = vst [vmem:[#allocation2 + $0x18] sm:$0xff] %v1172_v2   ;;  %v357_v13 = vpop.f32.mrf.mxu2  ;;  %v749_v40 = vpop.permute.xlu2 %748 }
  0xe5   :  { %1355 = vst [vmem:[#allocation2 + $0x58] sm:$0xff] %v1212_v5   ;;  %v1906_v14 = vpop.f32.mrf.mxu3  ;;  %v699_v23 = vpop.permute.xlu1 %698 }
  0xe6   :  { %v694_v7 = vpop.permute.xlu0 %693  ;;  %v264_v15 = vpop.f32.mrf.mxu0 }
  0xe7   :  { %v855_v16 = vmul.f32 %v694_v7, %v357_v13  ;;  %v312_v20 = vpop.f32.mrf.mxu1  ;;  %v824_v32 = vmul.f32 %v1731_v38, %v264_v15 }
  0xe8   :  { %v840_v3 = vmul.f32 %v1874_v46, %v312_v20 }
  0xe9   :  { %v1252_v24 = vpack.c.bf16 %v855_v16, %v854_v22 }
  0xeb   :  { %1363 = vst [vmem:[#allocation2 + $0x98] sm:$0xff] %v1252_v24  }
  0xec   :  { %v360_v59 = vpop.f32.mrf.mxu2  ;;  %v764_v2 = vpop.permute.xlu2 %763 }
  0xed   :  { %v1910_v48 = vpop.f32.mrf.mxu3  ;;  %v714_v27 = vpop.permute.xlu1 %713  ;;  %v856_v6 = vmul.f32 %v699_v23, %v360_v59 }
  0xee   :  { %v709_v29 = vpop.permute.xlu0 %708  ;;  %v267_v31 = vpop.f32.mrf.mxu0 }
  0xef   :  { %v825_v33 = vmul.f32 %v1815_v44, %v267_v31  ;;  %v315_v34 = vpop.f32.mrf.mxu1 }
  0xf0   :  { %v841_v47 = vmul.f32 %v1872_v45, %v315_v34 }
  0xf1   :  { %v1177_v21 = vpack.c.bf16 %v825_v33, %v824_v32 }
  0xf2   :  { %v1217_v39 = vpack.c.bf16 %v841_v47, %v840_v3 }
  0xf3   :  { %1348 = vst [vmem:[#allocation2 + $0x20] sm:$0xff] %v1177_v21  }
  0xf4   :  { %1356 = vst [vmem:[#allocation2 + $0x60] sm:$0xff] %v1217_v39   ;;  %v363_v43 = vpop.f32.mrf.mxu2 }
  0xf5   :  { %v857_v49 = vmul.f32 %v1893_v28, %v363_v43  ;;  %v1917_v51 = vpop.f32.mrf.mxu3  ;;  %v1919_v52 = vpop.permute.xlu1 %728 }
  0xf6   :  { %v1921_v38 = vpop.permute.xlu0 %723  ;;  %v270_v44 = vpop.f32.mrf.mxu0 }
  0xf7   :  { %v1257_v53 = vpack.c.bf16 %v857_v49, %v856_v6  ;;  %v318_v46 = vpop.f32.mrf.mxu1  ;;  %v826_v35 = vmul.f32 %v1811_v42, %v270_v44 }
  0xf8   :  { %v842_v5 = vmul.f32 %v1841_v8, %v318_v46  ;;  %v866_v8 = vmul.f32 %v749_v40, %v1870_v25 }
  0xf9   :  { %1364 = vst [vmem:[#allocation2 + $0xa0] sm:$0xff] %v1257_v53  }
  0xfc   :  { %v366_v45 = vpop.f32.mrf.mxu2 }
  0xfd   :  { %v414_v56 = vpop.f32.mrf.mxu3  ;;  %v744_v54 = vpop.permute.xlu1 %743  ;;  %v858_v22 = vmul.f32 %v709_v29, %v366_v45 }
  0xfe   :  { %v865_v41 = vmul.f32 %v744_v54, %v1866_v37  ;;  %v739_v57 = vpop.permute.xlu0 %738  ;;  %v273_v58 = vpop.f32.mrf.mxu0 }
  0xff   :  { %v864_v28 = vmul.f32 %v739_v57, %v1858_v19  ;;  %v827_v36 = vmul.f32 %v1746_v55, %v273_v58  ;;  %v321_v60 = vpop.f32.mrf.mxu1  ;;  %v869_v19 = vmul.f32 %v764_v2, %v1895_v30  ;;  %v779_v29 = vpop.permute.xlu2 %778 }
 0x100   :  { %v843_v13 = vmul.f32 %v1882_v1, %v321_v60 }
 0x101   :  { %v1277_v23 = vpack.c.bf16 %v865_v41, %v864_v28  ;;  %v1182_v7 = vpack.c.bf16 %v827_v36, %v826_v35 }
 0x102   :  { %v1222_v15 = vpack.c.bf16 %v843_v13, %v842_v5 }
 0x103   :  { %1368 = vst [vmem:[#allocation2 + $0xc0] sm:$0xff] %v1277_v23  }
 0x104   :  { %1349 = vst [vmem:[#allocation2 + $0x28] sm:$0xff] %v1182_v7   ;;  %v369_v37 = vpop.f32.mrf.mxu2 }
 0x105   :  { %1357 = vst [vmem:[#allocation2 + $0x68] sm:$0xff] %v1222_v15   ;;  %v859_v16 = vmul.f32 %v714_v27, %v369_v37  ;;  %v417_v42 = vpop.f32.mrf.mxu3  ;;  %v759_v20 = vpop.permute.xlu1 %758 }
 0x106   :  { %v868_v55 = vmul.f32 %v759_v20, %v1884_v4  ;;  %v754_v24 = vpop.permute.xlu0 %753  ;;  %v276_v59 = vpop.f32.mrf.mxu0 }
 0x107   :  { %v1262_v1 = vpack.c.bf16 %v859_v16, %v858_v22  ;;  %v867_v31 = vmul.f32 %v754_v24, %v1878_v63  ;;  %v324_v32 = vpop.f32.mrf.mxu1  ;;  %v828_v39 = vmul.f32 %v1830_v62, %v276_v59  ;;  %v794_v46 = vpop.permute.xlu2 %793 }
 0x108   :  { %v1287_v33 = vpack.c.bf16 %v869_v19, %v868_v55  ;;  %v844_v43 = vmul.f32 %v1880_v0, %v324_v32 }
 0x109   :  { %1365 = vst [vmem:[#allocation2 + $0xa8] sm:$0xff] %v1262_v1   ;;  %v1282_v34 = vpack.c.bf16 %v867_v31, %v866_v8 }
 0x10a   :  { %1370 = vst [vmem:[#allocation2 + $0xd0] sm:$0xff] %v1287_v33  }
 0x10b   :  { %1369 = vst [vmem:[#allocation2 + $0xc8] sm:$0xff] %v1282_v34  }
 0x10c   :  { %v372_v27 = vpop.f32.mrf.mxu2 }
 0x10d   :  { %v420_v3 = vpop.f32.mrf.mxu3  ;;  %v774_v47 = vpop.permute.xlu1 %773  ;;  %v860_v45 = vmul.f32 %v1902_v17, %v372_v27 }
 0x10e   :  { %v871_v30 = vmul.f32 %v774_v47, %v1906_v14  ;;  %v769_v4 = vpop.permute.xlu0 %768  ;;  %v279_v21 = vpop.f32.mrf.mxu0 }
 0x10f   :  { %v870_v25 = vmul.f32 %v769_v4, %v1898_v50  ;;  %v829_v63 = vmul.f32 %v1828_v61, %v279_v21  ;;  %v327_v40 = vpop.f32.mrf.mxu1  ;;  %v875_v61 = vmul.f32 %v794_v46, %v417_v42 }
 0x110   :  { %v845_v6 = vmul.f32 %v1856_v18, %v327_v40  ;;  %v872_v18 = vmul.f32 %v779_v29, %v1910_v48 }
 0x111   :  { %v1292_v49 = vpack.c.bf16 %v871_v30, %v870_v25  ;;  %v1187_v44 = vpack.c.bf16 %v829_v63, %v828_v39 }
 0x112   :  { %v1227_v53 = vpack.c.bf16 %v845_v6, %v844_v43 }
 0x113   :  { %1371 = vst [vmem:[#allocation2 + $0xd8] sm:$0xff] %v1292_v49  }
 0x114   :  { %1350 = vst [vmem:[#allocation2 + $0x30] sm:$0xff] %v1187_v44   ;;  %v375_v14 = vpop.f32.mrf.mxu2 }
 0x115   :  { %1358 = vst [vmem:[#allocation2 + $0x70] sm:$0xff] %v1227_v53   ;;  %v861_v62 = vmul.f32 %v1921_v38, %v375_v14  ;;  %v423_v50 = vpop.f32.mrf.mxu3  ;;  %v789_v54 = vpop.permute.xlu1 %788 }
 0x116   :  { %v874_v41 = vmul.f32 %v789_v54, %v414_v56  ;;  %v784_v57 = vpop.permute.xlu0 %783  ;;  %v282_v0 = vpop.f32.mrf.mxu0 }
 0x117   :  { %v1267_v58 = vpack.c.bf16 %v861_v62, %v860_v45  ;;  %v873_v35 = vmul.f32 %v784_v57, %v1917_v51  ;;  %v330_v28 = vpop.f32.mrf.mxu1  ;;  %v830_v56 = vmul.f32 %v1773_v10, %v282_v0 }
 0x118   :  { %v1302_v36 = vpack.c.bf16 %v875_v61, %v874_v41  ;;  %v846_v51 = vmul.f32 %v1888_v12, %v330_v28 }
 0x119   :  { %1366 = vst [vmem:[#allocation2 + $0xb0] sm:$0xff] %v1267_v58   ;;  %v1297_v60 = vpack.c.bf16 %v873_v35, %v872_v18 }
 0x11a   :  { %1373 = vst [vmem:[#allocation2 + $0xe8] sm:$0xff] %v1302_v36  }
 0x11b   :  { %1372 = vst [vmem:[#allocation2 + $0xe0] sm:$0xff] %v1297_v60  }
 0x11c   :  { %v378_v17 = vpop.f32.mrf.mxu2 }
 0x11d   :  { %v426_v2 = vpop.f32.mrf.mxu3  ;;  %v804_v38 = vpop.permute.xlu1 %803  ;;  %v862_v19 = vmul.f32 %v1919_v52, %v378_v17 }
 0x11e   :  { %v877_v5 = vmul.f32 %v804_v38, %v423_v50  ;;  %v799_v13 = vpop.permute.xlu0 %798  ;;  %v285_v23 = vpop.f32.mrf.mxu0 }
 0x11f   :  { %v876_v7 = vmul.f32 %v799_v13, %v420_v3  ;;  %v831_v48 = vmul.f32 %v1843_v11, %v285_v23  ;;  %v333_v15 = vpop.f32.mrf.mxu1  ;;  %v809_v11 = vpop.permute.xlu2 %808 }
 0x120   :  { %v847_v37 = vmul.f32 %v1886_v9, %v333_v15  ;;  %v878_v12 = vmul.f32 %v809_v11, %v426_v2 }
 0x121   :  { %v1307_v22 = vpack.c.bf16 %v877_v5, %v876_v7  ;;  %v1192_v16 = vpack.c.bf16 %v831_v48, %v830_v56 }
 0x122   :  { %v1232_v42 = vpack.c.bf16 %v847_v37, %v846_v51 }
 0x123   :  { %1374 = vst [vmem:[#allocation2 + $0xf0] sm:$0xff] %v1307_v22  }
 0x124   :  { %1351 = vst [vmem:[#allocation2 + $0x38] sm:$0xff] %v1192_v16   ;;  %v381_v20 = vpop.f32.mrf.mxu2 }
 0x125   :  { %1359 = vst [vmem:[#allocation2 + $0x78] sm:$0xff] %v1232_v42   ;;  %v863_v55 = vmul.f32 %v1908_v26, %v381_v20  ;;  %v429_v10 = vpop.f32.mrf.mxu3 }
 0x126   :  { %v814_v9 = vpop.permute.xlu0 %813 }
 0x127   :  { %v1272_v24 = vpack.c.bf16 %v863_v55, %v862_v19  ;;  %v879_v59 = vmul.f32 %v814_v9, %v429_v10 }
 0x129   :  { %1367 = vst [vmem:[#allocation2 + $0xb8] sm:$0xff] %v1272_v24   ;;  %v1312_v8 = vpack.c.bf16 %v879_v59, %v878_v12 }
 0x12b   :  { %1375 = vst [vmem:[#allocation2 + $0xf8] sm:$0xff] %v1312_v8  }
 0x12c   :  { %1020 = dma.vmem_to_hbm [thread:$0]  %s1013_s13, 4096, %s1015_s16, [#allocation3], %s1459_s17, %s1459_s17, %s1460_s18  }
 0x12d   :  { %1455 = dma.done.wait [#allocation3], 4096  }
 0x12e   :  { %1456 = vsyncadd [#allocation3], 4294963200 }
 0x12f   :  { %1025 = vsyncpa [#allocation3], 1 }

</bundles_post_ra>
